<compile_context>
chip_gen: v7x
topology: tpu7x:2x2x1
jax: 0.10.0
libtpu: 0.0.40
codegen_flags: <defaults>
</compile_context>

<pallas_src>
import jax
import jax.numpy as jnp
import numpy as np
from jax.experimental import pallas as pl
from jax.experimental.pallas import tpu as pltpu

# ----- problem sizes (small, consistent with the module) -----
N, H, W = 2, 16, 16
CIN = 4            # inplanes
COUT = 4           # planes (expansion = 1, downsample = None  =>  CIN == COUT)
EPS = 1e-5         # nn.BatchNorm default eps

HW = H * W         # 256 lanes  (2 full lane groups)
NC = N * CIN       # 8 sublanes (1 full tile height); == N * COUT


# -------------------- host-side constant preparation -------------------------
def make_blockdiag_weights(w):
    """(9, CIN, COUT) Minkowski kernel -> (N*COUT, 9*N*CIN) block-diagonal
    matrix (bf16) so the whole conv is one MXU matmul: out = Wbig @ im2col."""
    w_np = np.asarray(w)
    kvol, cin, cout = w_np.shape
    wb = np.zeros((N * cout, kvol * N * cin), np.float32)
    for k in range(kvol):
        for n in range(N):
            wb[n * cout:(n + 1) * cout,
               k * N * cin + n * cin:k * N * cin + (n + 1) * cin] = w_np[k].T
    return jnp.asarray(wb).astype(jnp.bfloat16)


def make_conv_masks():
    """(9*NC, H*W) validity mask, row k*NC + r = mask of tap k: 1 where the
    shifted tap stays inside the image (implements the 3x3 'same' zero pad and
    kills the lanes that wrap around in the lane rotate)."""
    m = np.zeros((9, H * W), np.float32)
    for k in range(9):
        dh, dw = k // 3 - 1, k % 3 - 1
        for h in range(H):
            for w in range(W):
                if 0 <= h + dh < H and 0 <= w + dw < W:
                    m[k, h * W + w] = 1.0
    return jnp.asarray(np.repeat(m, NC, axis=0))   # (9*NC, HW)


# ------------------------------ Pallas kernel ---------------------------------
def basic_block_kernel(x_ref, mask_ref, w1_ref, g1_ref, b1_ref,
                       w2_ref, g2_ref, b2_ref, out_ref):
    # x_ref:    (NC, HW)        NCHW-flattened input, lane-dense, f32
    # mask_ref: (9*NC, HW)      im2col validity mask (host pre-tiled), f32
    # w*_ref:   (NC, 9*NC)      block-diagonal conv weights, bf16
    # g*/b*_ref:(NC, 1)         BN gamma / beta, host-tiled per (n, c) row, f32
    # out_ref:  (NC, HW)        f32
    x = x_ref[...]
    mask = mask_ref[...]

    def conv3x3(act, wref):
        # im2col via XLU lane rotates: tap_k[:, p] = act[:, (p + dh*W + dw) % HW];
        # the mask zeroes exactly the lanes where that flat shift leaves the image.
        taps = []
        for k in range(9):
            dh, dw = k // 3 - 1, k % 3 - 1
            s = dh * W + dw
            taps.append(act if s == 0
                        else pltpu.roll(act, shift=(-s) % HW, axis=1))
        col = jnp.concatenate(taps, axis=0) * mask           # (9*NC, HW) f32
        # bf16 MXU operands, f32 accumulation.
        return jnp.dot(wref[...], col.astype(jnp.bfloat16),
                       preferred_element_type=jnp.float32)   # (NC, HW) f32

    def fold_batch(s):
        # (NC, 1) per-row sums -> per-channel sums replicated over the batch
        # sublane groups (row layout is n*COUT + c).
        t = s[0:COUT, :]
        for n in range(1, N):
            t = t + s[n * COUT:(n + 1) * COUT, :]
        return jnp.concatenate([t] * N, axis=0)              # (NC, 1)

    def bn(y, gamma, beta):
        # Training-mode batch-norm (batch stats, biased variance), single pass,
        # column-stat formulation: everything stays in (8, 128)-dense tiles.
        cnt = float(N * HW)
        s1 = fold_batch(jnp.sum(y, axis=-1, keepdims=True))        # (NC, 1)
        s2 = fold_batch(jnp.sum(y * y, axis=-1, keepdims=True))    # (NC, 1)
        mean = s1 * (1.0 / cnt)
        var = jnp.maximum(s2 * (1.0 / cnt) - mean * mean, 0.0)     # clamp >= 0
        scale = gamma * jax.lax.rsqrt(var + EPS)                   # (NC, 1)
        shift = beta - mean * scale
        return y * scale + shift                                   # one FMA

    y = jnp.maximum(bn(conv3x3(x, w1_ref), g1_ref[...], b1_ref[...]), 0.0)
    z = bn(conv3x3(y, w2_ref), g2_ref[...], b2_ref[...])
    # identity residual (CIN == COUT, downsample=None) + final ReLU
    out_ref[...] = jnp.maximum(z + x, 0.0)


# --------------------------------- wrapper ------------------------------------
@jax.jit
def basic_block_forward(x_nchw, params):
    # NCHW -> (N*C, H*W) is a contiguous (free) reshape: no transpose, no pad.
    xf = x_nchw.astype(jnp.float32).reshape(N * CIN, H * W)

    vmem = pl.BlockSpec(memory_space=pltpu.MemorySpace.VMEM)
    out = pl.pallas_call(
        basic_block_kernel,
        out_shape=jax.ShapeDtypeStruct((N * COUT, H * W), jnp.float32),
        in_specs=[vmem] * 8,
        out_specs=vmem,
    )(xf, params["mask"],
      params["wbig1"], params["g1k"], params["b1k"],
      params["wbig2"], params["g2k"], params["b2k"])

    return out.reshape(N, COUT, H, W)                        # free metadata reshape


# ---------------------------- pure-JAX reference -------------------------------
def reference_forward(x_nchw, params):
    x = jnp.transpose(x_nchw, (0, 2, 3, 1)).astype(jnp.float32)   # NHWC

    def conv(inp, w):
        xp = jnp.pad(inp, ((0, 0), (1, 1), (1, 1), (0, 0)))
        acc = jnp.zeros(inp.shape[:3] + (w.shape[-1],), jnp.float32)
        for kh in range(3):
            for kw in range(3):
                acc = acc + jnp.einsum(
                    "nhwc,cd->nhwd",
                    xp[:, kh:kh + H, kw:kw + W, :], w[kh * 3 + kw],
                    precision=jax.lax.Precision.HIGHEST)
        return acc

    def bn(y, g, b):
        yf = y.reshape(-1, y.shape[-1])
        m = jnp.mean(yf, axis=0)
        v = jnp.mean((yf - m) ** 2, axis=0)               # biased variance
        return (y - m) / jnp.sqrt(v + EPS) * g + b

    out = jnp.maximum(bn(conv(x, params["w1"]), params["g1"], params["b1"]), 0.0)
    out = bn(conv(out, params["w2"]), params["g2"], params["b2"]) + x
    out = jnp.maximum(out, 0.0)
    return jnp.transpose(out, (0, 3, 1, 2))


# ----------------------------------- main --------------------------------------
if __name__ == "__main__":
    key = jax.random.PRNGKey(0)
    kx, k1, k2, kg1, kb1, kg2, kb2 = jax.random.split(key, 7)

    # Minkowski conv kernel layout: (kernel_volume, in_ch, out_ch) = (9, C, C)
    w1 = 0.1 * jax.random.normal(k1, (9, CIN, COUT), jnp.float32)
    w2 = 0.1 * jax.random.normal(k2, (9, COUT, COUT), jnp.float32)
    g1 = 1.0 + 0.1 * jax.random.normal(kg1, (COUT,), jnp.float32)
    b1 = 0.1 * jax.random.normal(kb1, (COUT,), jnp.float32)
    g2 = 1.0 + 0.1 * jax.random.normal(kg2, (COUT,), jnp.float32)
    b2 = 0.1 * jax.random.normal(kb2, (COUT,), jnp.float32)

    def tile_param(p):   # (COUT,) -> (N*COUT, 1); row n*COUT + c gets p[c]
        return jnp.tile(p, (N,)).reshape(N * COUT, 1)

    params = {
        # reference-form parameters (f32)
        "w1": w1, "w2": w2, "g1": g1, "b1": b1, "g2": g2, "b2": b2,
        # kernel-ready constants (precomputed once, outside the forward pass)
        "wbig1": make_blockdiag_weights(w1),       # bf16 MXU operand
        "wbig2": make_blockdiag_weights(w2),       # bf16 MXU operand
        "mask": make_conv_masks(),                 # (9*NC, HW) f32
        "g1k": tile_param(g1), "b1k": tile_param(b1),
        "g2k": tile_param(g2), "b2k": tile_param(b2),
    }

    x = jax.random.normal(kx, (N, CIN, H, W), jnp.float32)   # NCHW like PyTorch

    out = jax.block_until_ready(basic_block_forward(x, params))
    ref = jax.block_until_ready(reference_forward(x, params))

    assert out.shape == (N, COUT, H, W)
    # Tolerance widened slightly vs the all-f32 version because the conv MXU
    # operands are bf16 (f32 accumulation); everything else is f32.
    np.testing.assert_allclose(np.asarray(out), np.asarray(ref),
                               rtol=1e-2, atol=2e-2)

    print("KERNEL_OK")
</pallas_src>

<mosaic_0001>
module attributes {stable_mosaic.version = 11 : i64} {
  func.func @basic_block_kernel(%arg0: memref<8x256xf32, #tpu.memory_space<vmem>>, %arg1: memref<72x256xf32, #tpu.memory_space<vmem>>, %arg2: memref<8x72xbf16, #tpu.memory_space<vmem>>, %arg3: memref<8x1xf32, #tpu.memory_space<vmem>>, %arg4: memref<8x1xf32, #tpu.memory_space<vmem>>, %arg5: memref<8x72xbf16, #tpu.memory_space<vmem>>, %arg6: memref<8x1xf32, #tpu.memory_space<vmem>>, %arg7: memref<8x1xf32, #tpu.memory_space<vmem>>, %arg8: memref<8x256xf32, #tpu.memory_space<vmem>>) attributes {dimension_semantics = [], scalar_prefetch = 0 : i64, scratch_operands = 0 : i64, tpu.core_type = #tpu.core_type<tc>} {
    %c0 = arith.constant 0 : index
    %c0_0 = arith.constant 0 : index
    %0 = vector.load %arg0[%c0, %c0_0] : memref<8x256xf32, #tpu.memory_space<vmem>>, vector<8x256xf32>
    %c0_1 = arith.constant 0 : index
    %c0_2 = arith.constant 0 : index
    %1 = vector.load %arg1[%c0_1, %c0_2] : memref<72x256xf32, #tpu.memory_space<vmem>>, vector<72x256xf32>
    %c17_i32 = arith.constant 17 : i32
    %2 = tpu.dynamic_rotate %0 by %c17_i32 dim 1 : vector<8x256xf32>, i32 -> vector<8x256xf32>
    %c16_i32 = arith.constant 16 : i32
    %3 = tpu.dynamic_rotate %0 by %c16_i32 dim 1 : vector<8x256xf32>, i32 -> vector<8x256xf32>
    %c15_i32 = arith.constant 15 : i32
    %4 = tpu.dynamic_rotate %0 by %c15_i32 dim 1 : vector<8x256xf32>, i32 -> vector<8x256xf32>
    %c1_i32 = arith.constant 1 : i32
    %5 = tpu.dynamic_rotate %0 by %c1_i32 dim 1 : vector<8x256xf32>, i32 -> vector<8x256xf32>
    %c255_i32 = arith.constant 255 : i32
    %6 = tpu.dynamic_rotate %0 by %c255_i32 dim 1 : vector<8x256xf32>, i32 -> vector<8x256xf32>
    %c241_i32 = arith.constant 241 : i32
    %7 = tpu.dynamic_rotate %0 by %c241_i32 dim 1 : vector<8x256xf32>, i32 -> vector<8x256xf32>
    %c240_i32 = arith.constant 240 : i32
    %8 = tpu.dynamic_rotate %0 by %c240_i32 dim 1 : vector<8x256xf32>, i32 -> vector<8x256xf32>
    %c239_i32 = arith.constant 239 : i32
    %9 = tpu.dynamic_rotate %0 by %c239_i32 dim 1 : vector<8x256xf32>, i32 -> vector<8x256xf32>
    %10 = tpu.concatenate %2, %3, %4, %5, %0, %6, %7, %8, %9 in 0 : vector<8x256xf32>, vector<8x256xf32>, vector<8x256xf32>, vector<8x256xf32>, vector<8x256xf32>, vector<8x256xf32>, vector<8x256xf32>, vector<8x256xf32>, vector<8x256xf32> -> vector<72x256xf32>
    %11 = arith.mulf %10, %1 : vector<72x256xf32>
    %c0_3 = arith.constant 0 : index
    %c0_4 = arith.constant 0 : index
    %12 = vector.load %arg2[%c0_3, %c0_4] : memref<8x72xbf16, #tpu.memory_space<vmem>>, vector<8x72xbf16>
    %13 = arith.truncf %11 : vector<72x256xf32> to vector<72x256xbf16>
    %cst = arith.constant dense<0.000000e+00> : vector<8x256xf32>
    %14 = tpu.matmul %12, %13, %cst {dimension_numbers = #tpu.dot_dimension_numbers<[1], [0], [0], [1], [0, 0, 1, 1], [], []>} : vector<8x72xbf16>, vector<72x256xbf16>, vector<8x256xf32> -> vector<8x256xf32>
    %c0_5 = arith.constant 0 : index
    %c0_6 = arith.constant 0 : index
    %15 = vector.load %arg3[%c0_5, %c0_6] : memref<8x1xf32, #tpu.memory_space<vmem>>, vector<8x1xf32>
    %c0_7 = arith.constant 0 : index
    %c0_8 = arith.constant 0 : index
    %16 = vector.load %arg4[%c0_7, %c0_8] : memref<8x1xf32, #tpu.memory_space<vmem>>, vector<8x1xf32>
    %cst_9 = arith.constant dense<0.000000e+00> : vector<8xf32>
    %17 = vector.multi_reduction <add>, %14, %cst_9 [1] : vector<8x256xf32> to vector<8xf32>
    %18 = vector.shape_cast %17 : vector<8xf32> to vector<8x1xf32>
    %19 = vector.extract_strided_slice %18 {offsets = [0, 0], sizes = [4, 1], strides = [1, 1]} : vector<8x1xf32> to vector<4x1xf32>
    %20 = vector.extract_strided_slice %18 {offsets = [4, 0], sizes = [4, 1], strides = [1, 1]} : vector<8x1xf32> to vector<4x1xf32>
    %21 = arith.addf %19, %20 : vector<4x1xf32>
    %22 = tpu.concatenate %21, %21 in 0 : vector<4x1xf32>, vector<4x1xf32> -> vector<8x1xf32>
    %23 = arith.mulf %14, %14 : vector<8x256xf32>
    %cst_10 = arith.constant dense<0.000000e+00> : vector<8xf32>
    %24 = vector.multi_reduction <add>, %23, %cst_10 [1] : vector<8x256xf32> to vector<8xf32>
    %25 = vector.shape_cast %24 : vector<8xf32> to vector<8x1xf32>
    %26 = vector.extract_strided_slice %25 {offsets = [0, 0], sizes = [4, 1], strides = [1, 1]} : vector<8x1xf32> to vector<4x1xf32>
    %27 = vector.extract_strided_slice %25 {offsets = [4, 0], sizes = [4, 1], strides = [1, 1]} : vector<8x1xf32> to vector<4x1xf32>
    %28 = arith.addf %26, %27 : vector<4x1xf32>
    %29 = tpu.concatenate %28, %28 in 0 : vector<4x1xf32>, vector<4x1xf32> -> vector<8x1xf32>
    %cst_11 = arith.constant 0.001953125 : f32
    %30 = vector.broadcast %cst_11 : f32 to vector<8x1xf32>
    %31 = arith.mulf %22, %30 : vector<8x1xf32>
    %cst_12 = arith.constant 0.001953125 : f32
    %32 = vector.broadcast %cst_12 : f32 to vector<8x1xf32>
    %33 = arith.mulf %29, %32 : vector<8x1xf32>
    %34 = arith.mulf %31, %31 : vector<8x1xf32>
    %35 = arith.subf %33, %34 : vector<8x1xf32>
    %cst_13 = arith.constant 0.000000e+00 : f32
    %36 = vector.broadcast %cst_13 : f32 to vector<8x1xf32>
    %37 = arith.maximumf %35, %36 : vector<8x1xf32>
    %cst_14 = arith.constant 9.99999974E-6 : f32
    %38 = vector.broadcast %cst_14 : f32 to vector<8x1xf32>
    %39 = arith.addf %37, %38 : vector<8x1xf32>
    %40 = math.rsqrt %39 : vector<8x1xf32>
    %41 = arith.mulf %15, %40 : vector<8x1xf32>
    %42 = arith.mulf %31, %41 : vector<8x1xf32>
    %43 = arith.subf %16, %42 : vector<8x1xf32>
    %44 = vector.broadcast %41 : vector<8x1xf32> to vector<8x256xf32>
    %45 = arith.mulf %14, %44 : vector<8x256xf32>
    %46 = vector.broadcast %43 : vector<8x1xf32> to vector<8x256xf32>
    %47 = arith.addf %45, %46 : vector<8x256xf32>
    %cst_15 = arith.constant 0.000000e+00 : f32
    %48 = vector.broadcast %cst_15 : f32 to vector<8x256xf32>
    %49 = arith.maximumf %47, %48 : vector<8x256xf32>
    %c17_i32_16 = arith.constant 17 : i32
    %50 = tpu.dynamic_rotate %49 by %c17_i32_16 dim 1 : vector<8x256xf32>, i32 -> vector<8x256xf32>
    %c16_i32_17 = arith.constant 16 : i32
    %51 = tpu.dynamic_rotate %49 by %c16_i32_17 dim 1 : vector<8x256xf32>, i32 -> vector<8x256xf32>
    %c15_i32_18 = arith.constant 15 : i32
    %52 = tpu.dynamic_rotate %49 by %c15_i32_18 dim 1 : vector<8x256xf32>, i32 -> vector<8x256xf32>
    %c1_i32_19 = arith.constant 1 : i32
    %53 = tpu.dynamic_rotate %49 by %c1_i32_19 dim 1 : vector<8x256xf32>, i32 -> vector<8x256xf32>
    %c255_i32_20 = arith.constant 255 : i32
    %54 = tpu.dynamic_rotate %49 by %c255_i32_20 dim 1 : vector<8x256xf32>, i32 -> vector<8x256xf32>
    %c241_i32_21 = arith.constant 241 : i32
    %55 = tpu.dynamic_rotate %49 by %c241_i32_21 dim 1 : vector<8x256xf32>, i32 -> vector<8x256xf32>
    %c240_i32_22 = arith.constant 240 : i32
    %56 = tpu.dynamic_rotate %49 by %c240_i32_22 dim 1 : vector<8x256xf32>, i32 -> vector<8x256xf32>
    %c239_i32_23 = arith.constant 239 : i32
    %57 = tpu.dynamic_rotate %49 by %c239_i32_23 dim 1 : vector<8x256xf32>, i32 -> vector<8x256xf32>
    %58 = tpu.concatenate %50, %51, %52, %53, %49, %54, %55, %56, %57 in 0 : vector<8x256xf32>, vector<8x256xf32>, vector<8x256xf32>, vector<8x256xf32>, vector<8x256xf32>, vector<8x256xf32>, vector<8x256xf32>, vector<8x256xf32>, vector<8x256xf32> -> vector<72x256xf32>
    %59 = arith.mulf %58, %1 : vector<72x256xf32>
    %c0_24 = arith.constant 0 : index
    %c0_25 = arith.constant 0 : index
    %60 = vector.load %arg5[%c0_24, %c0_25] : memref<8x72xbf16, #tpu.memory_space<vmem>>, vector<8x72xbf16>
    %61 = arith.truncf %59 : vector<72x256xf32> to vector<72x256xbf16>
    %cst_26 = arith.constant dense<0.000000e+00> : vector<8x256xf32>
    %62 = tpu.matmul %60, %61, %cst_26 {dimension_numbers = #tpu.dot_dimension_numbers<[1], [0], [0], [1], [0, 0, 1, 1], [], []>} : vector<8x72xbf16>, vector<72x256xbf16>, vector<8x256xf32> -> vector<8x256xf32>
    %c0_27 = arith.constant 0 : index
    %c0_28 = arith.constant 0 : index
    %63 = vector.load %arg6[%c0_27, %c0_28] : memref<8x1xf32, #tpu.memory_space<vmem>>, vector<8x1xf32>
    %c0_29 = arith.constant 0 : index
    %c0_30 = arith.constant 0 : index
    %64 = vector.load %arg7[%c0_29, %c0_30] : memref<8x1xf32, #tpu.memory_space<vmem>>, vector<8x1xf32>
    %cst_31 = arith.constant dense<0.000000e+00> : vector<8xf32>
    %65 = vector.multi_reduction <add>, %62, %cst_31 [1] : vector<8x256xf32> to vector<8xf32>
    %66 = vector.shape_cast %65 : vector<8xf32> to vector<8x1xf32>
    %67 = vector.extract_strided_slice %66 {offsets = [0, 0], sizes = [4, 1], strides = [1, 1]} : vector<8x1xf32> to vector<4x1xf32>
    %68 = vector.extract_strided_slice %66 {offsets = [4, 0], sizes = [4, 1], strides = [1, 1]} : vector<8x1xf32> to vector<4x1xf32>
    %69 = arith.addf %67, %68 : vector<4x1xf32>
    %70 = tpu.concatenate %69, %69 in 0 : vector<4x1xf32>, vector<4x1xf32> -> vector<8x1xf32>
    %71 = arith.mulf %62, %62 : vector<8x256xf32>
    %cst_32 = arith.constant dense<0.000000e+00> : vector<8xf32>
    %72 = vector.multi_reduction <add>, %71, %cst_32 [1] : vector<8x256xf32> to vector<8xf32>
    %73 = vector.shape_cast %72 : vector<8xf32> to vector<8x1xf32>
    %74 = vector.extract_strided_slice %73 {offsets = [0, 0], sizes = [4, 1], strides = [1, 1]} : vector<8x1xf32> to vector<4x1xf32>
    %75 = vector.extract_strided_slice %73 {offsets = [4, 0], sizes = [4, 1], strides = [1, 1]} : vector<8x1xf32> to vector<4x1xf32>
    %76 = arith.addf %74, %75 : vector<4x1xf32>
    %77 = tpu.concatenate %76, %76 in 0 : vector<4x1xf32>, vector<4x1xf32> -> vector<8x1xf32>
    %cst_33 = arith.constant 0.001953125 : f32
    %78 = vector.broadcast %cst_33 : f32 to vector<8x1xf32>
    %79 = arith.mulf %70, %78 : vector<8x1xf32>
    %cst_34 = arith.constant 0.001953125 : f32
    %80 = vector.broadcast %cst_34 : f32 to vector<8x1xf32>
    %81 = arith.mulf %77, %80 : vector<8x1xf32>
    %82 = arith.mulf %79, %79 : vector<8x1xf32>
    %83 = arith.subf %81, %82 : vector<8x1xf32>
    %cst_35 = arith.constant 0.000000e+00 : f32
    %84 = vector.broadcast %cst_35 : f32 to vector<8x1xf32>
    %85 = arith.maximumf %83, %84 : vector<8x1xf32>
    %cst_36 = arith.constant 9.99999974E-6 : f32
    %86 = vector.broadcast %cst_36 : f32 to vector<8x1xf32>
    %87 = arith.addf %85, %86 : vector<8x1xf32>
    %88 = math.rsqrt %87 : vector<8x1xf32>
    %89 = arith.mulf %63, %88 : vector<8x1xf32>
    %90 = arith.mulf %79, %89 : vector<8x1xf32>
    %91 = arith.subf %64, %90 : vector<8x1xf32>
    %92 = vector.broadcast %89 : vector<8x1xf32> to vector<8x256xf32>
    %93 = arith.mulf %62, %92 : vector<8x256xf32>
    %94 = vector.broadcast %91 : vector<8x1xf32> to vector<8x256xf32>
    %95 = arith.addf %93, %94 : vector<8x256xf32>
    %96 = arith.addf %95, %0 : vector<8x256xf32>
    %cst_37 = arith.constant 0.000000e+00 : f32
    %97 = vector.broadcast %cst_37 : f32 to vector<8x256xf32>
    %98 = arith.maximumf %96, %97 : vector<8x256xf32>
    %c0_38 = arith.constant 0 : index
    %c0_39 = arith.constant 0 : index
    %99 = vector.load %arg8[%c0_38, %c0_39] : memref<8x256xf32, #tpu.memory_space<vmem>>, vector<8x256xf32>
    tpu.vector_store %arg8[%c0_38, %c0_39], %98 {strides = array<i32>} : memref<8x256xf32, #tpu.memory_space<vmem>>, vector<8x256xf32>,
    return
  }
}

</mosaic_0001>

<bundles_post_ra>
// kernel: basic_block_forward.1
= control target key start
LH: loop header
LB: loop body
LE: loop exit
PB: predicated region body
PF: predicated region fallthrough
CT: control target
= control target key end

     0   :  { %s447_s29 = smov 16   ;;  %s448_s30 = smov 17   ;;  %v453_v2 = vmov 0   ;;  %v54_v3 = vlaneseq  ;;  %vm141_vm8 = vcmask 1043456   ;;  %vm137_vm9 = vcmask 588800   ;;  %s797_s0 = inlined_call_operand.vmem [shape: f32[8,256], index: 0, kind: input, shape index: {}]   ;;  %s798_s1 = inlined_call_operand.vmem [shape: f32[72,256], index: 1, kind: input, shape index: {}]   ;;  %s799_s2 = inlined_call_operand.vmem [shape: bf16[8,72], index: 2, kind: input, shape index: {}]   ;;  %s800_s3 = inlined_call_operand.vmem [shape: f32[8,1], index: 3, kind: input, shape index: {}]   ;;  %s801_s4 = inlined_call_operand.vmem [shape: f32[8,1], index: 4, kind: input, shape index: {}]   ;;  %s802_s5 = inlined_call_operand.vmem [shape: bf16[8,72], index: 5, kind: input, shape index: {}]   ;;  %s803_s6 = inlined_call_operand.vmem [shape: f32[8,1], index: 6, kind: input, shape index: {}]   ;;  %s804_s7 = inlined_call_operand.vmem [shape: f32[8,1], index: 7, kind: input, shape index: {}]   ;;  %s805_s8 = inlined_call_operand.vmem [shape: f32[8,256], index: 8, kind: output, shape index: {}]  }
   0x1   :  { %v504_v0 = vld [vmem:[%s797_s0] sm:$0xff]  ;;  %v513_v1 = vld [vmem:[%s797_s0 + $0x8] sm:$0xff]  ;;  %s449_s11 = smov 15   ;;  %s450_s12 = smov 1   ;;  %180 = vmatprep.mubr.bf16.mxu0 %v453_v2  ;;  %441 = vset.pattern.permute.xlu0 %v453_v2  ;;  %v548_v7 = vld [vmem:[%s798_s1 + $0x10] sm:$0xff] }
   0x2   :  { %59 = vrot.lane.b32.xlu1 %v504_v0, %s447_s29  ;;  %50 = vrot.lane.b32.xlu0 %v504_v0, %s448_s30  ;;  %s451_s0 = smov 127   ;;  %s452_s13 = smov 113   ;;  %v543_v4 = vand.u32 127, %v54_v3  ;;  %v555_v8 = vld [vmem:[%s798_s1] sm:$0xff]  ;;  %v560_v9 = vld [vmem:[%s798_s1 + $0x8] sm:$0xff] }
   0x3   :  { %442 = vset.pattern.permute.xlu1 %v453_v2  ;;  %359 = vmatprep.mubr.bf16.mxu1 %v453_v2  ;;  %s454_s14 = smov 112   ;;  %s455_s15 = smov 111   ;;  %v565_v10 = vld [vmem:[%s798_s1 + $0x18] sm:$0xff]  ;;  %v583_v25 = vld [vmem:[%s798_s1 + $0x20] sm:$0xff]  ;;  %v589_v26 = vld [vmem:[%s798_s1 + $0x28] sm:$0xff] }
   0x4   :  { %vm63_vm0 = vcmp.lt.s32.totalorder %v543_v4, 16  ;;  %vm56_vm1 = vcmp.lt.s32.totalorder %v543_v4, 17  ;;  %vm70_vm2 = vcmp.lt.s32.totalorder %v543_v4, 15  ;;  %vm77_vm3 = vcmp.lt.s32.totalorder %v543_v4, 1  ;;  %v598_v29 = vld [vmem:[%s798_s1 + $0x30] sm:$0xff]  ;;  %v603_v30 = vld [vmem:[%s798_s1 + $0x38] sm:$0xff] }
   0x5   :  { %vm84_vm4 = vcmp.lt.s32.totalorder %v543_v4, 127  ;;  %v613_v35 = vld [vmem:[%s798_s1 + $0x48] sm:$0xff]  ;;  %v618_v36 = vld [vmem:[%s798_s1 + $0x40] sm:$0xff]  ;;  %v627_v41 = vld [vmem:[%s798_s1 + $0x50] sm:$0xff]  ;;  %vm91_vm5 = vcmp.lt.s32.totalorder %v543_v4, 113  ;;  %vm98_vm6 = vcmp.lt.s32.totalorder %v543_v4, 112 }
   0x6   :  { %61 = vrot.lane.b32.xlu1 %v513_v1, %s447_s29  ;;  %52 = vrot.lane.b32.xlu0 %v513_v1, %s448_s30  ;;  %v632_v42 = vld [vmem:[%s798_s1 + $0x58] sm:$0xff]  ;;  %v117_v47 = vmul.f32 %v613_v35, %v513_v1  ;;  %v116_v48 = vmul.f32 %v618_v36, %v504_v0  ;;  %v648_v57 = vld [vmem:[%s798_s1 + $0x60] sm:$0xff]  ;;  %vm105_vm7 = vcmp.lt.s32.totalorder %v543_v4, 111 }
   0x7   :  { %v654_v58 = vld [vmem:[%s798_s1 + $0x68] sm:$0xff]  ;;  %v663_v61 = vld [vmem:[%s798_s1 + $0x70] sm:$0xff]  ;;  %v668_v62 = vld [vmem:[%s798_s1 + $0x78] sm:$0xff] }
   0xa   :  { %68 = vrot.lane.b32.xlu1 %v513_v1, %s449_s11  ;;  %66 = vrot.lane.b32.xlu0 %v504_v0, %s449_s11 }
   0xe   :  { %75 = vrot.lane.b32.xlu1 %v513_v1, %s450_s12  ;;  %73 = vrot.lane.b32.xlu0 %v504_v0, %s450_s12 }
  0x12   :  { %82 = vrot.lane.b32.xlu1 %v513_v1, %s451_s0  ;;  %80 = vrot.lane.b32.xlu0 %v504_v0, %s451_s0 }
  0x16   :  { %89 = vrot.lane.b32.xlu1 %v513_v1, %s452_s13  ;;  %87 = vrot.lane.b32.xlu0 %v504_v0, %s452_s13 }
  0x1a   :  { %96 = vrot.lane.b32.xlu1 %v513_v1, %s454_s14  ;;  %94 = vrot.lane.b32.xlu0 %v504_v0, %s454_s14 }
  0x1e   :  { %103 = vrot.lane.b32.xlu1 %v513_v1, %s455_s15  ;;  %101 = vrot.lane.b32.xlu0 %v504_v0, %s455_s15 }
  0x74   :  { %v60_v5 = vpop.permute.xlu1 %59  ;;  %v51_v6 = vpop.permute.xlu0 %50 }
  0x78   :  { %v62_v11 = vpop.permute.xlu1 %61  ;;  %v53_v12 = vpop.permute.xlu0 %52 }
  0x79   :  { %v64_v13 = vsel %vm63_vm0, %v60_v5, %v62_v11  ;;  %v65_v14 = vsel %vm63_vm0, %v62_v11, %v60_v5  ;;  %v57_v15 = vsel %vm56_vm1, %v51_v6, %v53_v12  ;;  %v58_v16 = vsel %vm56_vm1, %v53_v12, %v51_v6 }
  0x7a   :  { %v110_v17 = vmul.f32 %v65_v14, %v548_v7  ;;  %v108_v18 = vmul.f32 %v58_v16, %v555_v8  ;;  %v109_v19 = vmul.f32 %v57_v15, %v560_v9  ;;  %v111_v20 = vmul.f32 %v64_v13, %v565_v10  ;;  %v682_v14 = vld [vmem:[%s798_s1 + $0x80] sm:$0xff]  ;;  %v687_v15 = vld [vmem:[%s798_s1 + $0x88] sm:$0xff] }
  0x7c   :  { %v69_v21 = vpop.permute.xlu1 %68  ;;  %v67_v22 = vpop.permute.xlu0 %66  ;;  %v128_v23 = vpack.c.bf16 %v111_v20, %v109_v19  ;;  %v127_v24 = vpack.c.bf16 %v110_v17, %v108_v18 }
  0x7d   :  { %v71_v27 = vsel %vm70_vm2, %v67_v22, %v69_v21  ;;  %v72_v28 = vsel %vm70_vm2, %v69_v21, %v67_v22 }
  0x7e   :  { %148 = vmatprep.subr.bf16.mxu0 %v128_v23  ;;  %v112_v37 = vmul.f32 %v72_v28, %v583_v25  ;;  %v113_v38 = vmul.f32 %v71_v27, %v589_v26 }
  0x7f   :  { %149 = vmatpush1.bf16.msra.mxu0 %v127_v24 }
  0x80   :  { %v76_v31 = vpop.permute.xlu1 %75  ;;  %v74_v32 = vpop.permute.xlu0 %73 }
  0x81   :  { %v78_v33 = vsel %vm77_vm3, %v74_v32, %v76_v31  ;;  %v79_v34 = vsel %vm77_vm3, %v76_v31, %v74_v32  ;;  %v126_v31 = vld [vmem:[%s799_s2] sm:$0xf] }
  0x82   :  { %v114_v39 = vmul.f32 %v79_v34, %v598_v29  ;;  %v115_v40 = vmul.f32 %v78_v33, %v603_v30 }
  0x84   :  { %v83_v43 = vpop.permute.xlu1 %82  ;;  %v81_v44 = vpop.permute.xlu0 %80  ;;  %v130_v45 = vpack.c.bf16 %v115_v40, %v113_v38  ;;  %v129_v46 = vpack.c.bf16 %v114_v39, %v112_v37 }
  0x85   :  { %v85_v49 = vsel %vm84_vm4, %v81_v44, %v83_v43  ;;  %v86_v50 = vsel %vm84_vm4, %v83_v43, %v81_v44 }
  0x86   :  { %v118_v51 = vmul.f32 %v85_v49, %v627_v41  ;;  %v119_v52 = vmul.f32 %v86_v50, %v632_v42  ;;  %150 = vmatprep.subr.bf16.mxu0 %v130_v45 }
  0x87   :  { %151 = vmatpush1.bf16.msra.mxu0 %v129_v46 }
  0x88   :  { %v90_v53 = vpop.permute.xlu1 %89  ;;  %v88_v54 = vpop.permute.xlu0 %87  ;;  %v132_v55 = vpack.c.bf16 %v119_v52, %v117_v47  ;;  %v131_v56 = vpack.c.bf16 %v118_v51, %v116_v48 }
  0x89   :  { %v92_v59 = vsel %vm91_vm5, %v88_v54, %v90_v53  ;;  %v93_v60 = vsel %vm91_vm5, %v90_v53, %v88_v54 }
  0x8a   :  { %152 = vmatprep.subr.bf16.mxu0 %v132_v55  ;;  %v120_v6 = vmul.f32 %v92_v59, %v648_v57  ;;  %v121_v11 = vmul.f32 %v93_v60, %v654_v58 }
  0x8b   :  { %153 = vmatpush1.bf16.msra.mxu0 %v131_v56 }
  0x8c   :  { %v97_v63 = vpop.permute.xlu1 %96  ;;  %v95_v2 = vpop.permute.xlu0 %94 }
  0x8d   :  { %v99_v3 = vsel %vm98_vm6, %v95_v2, %v97_v63  ;;  %v100_v5 = vsel %vm98_vm6, %v97_v63, %v95_v2  ;;  %v189_v2 = vld [vmem:[%s800_s3] sm:$0xff] }
  0x8e   :  { %v122_v12 = vmul.f32 %v99_v3, %v663_v61  ;;  %v123_v13 = vmul.f32 %v100_v5, %v668_v62 }
  0x90   :  { %v104_v16 = vpop.permute.xlu1 %103  ;;  %v102_v17 = vpop.permute.xlu0 %101  ;;  %v134_v18 = vpack.c.bf16 %v123_v13, %v121_v11  ;;  %v133_v19 = vpack.c.bf16 %v122_v12, %v120_v6  ;;  %v190_v6 = vld [vmem:[%s801_s4] sm:$0xff] }
  0x91   :  { %v106_v20 = vsel %vm105_vm7, %v102_v17, %v104_v16  ;;  %v107_v21 = vsel %vm105_vm7, %v104_v16, %v102_v17 }
  0x92   :  { %v124_v22 = vmul.f32 %v106_v20, %v682_v14  ;;  %v125_v23 = vmul.f32 %v107_v21, %v687_v15  ;;  %154 = vmatprep.subr.bf16.mxu0 %v134_v18 }
  0x93   :  { %155 = vmatpush1.bf16.msra.mxu0 %v133_v19 }
  0x94   :  { %v135_v24 = vpack.c.bf16 %v124_v22, %v124_v22  ;;  %v136_v27 = vpack.c.bf16 %v125_v23, %v125_v23 }
  0x96   :  { %428 = vmatprep.subr.msk.bf16.mxu0 %vm141_vm8, %v136_v27  ;;  %v143_v28 = vsel %vm141_vm8, %v135_v24, 0 }
  0x97   :  { %157 = vmatpush1.bf16.msra.mxu0 %v143_v28 }
  0x9a   :  { %429 = vmatmul.mubr.msk.bf16.vlgmr.msra.gmra.mrb[0].mxu0 %vm137_vm9, %v126_v31 }
 0x16d   :  { %v182_v32 = vpop.f32.mrb[0].mxu0 }
 0x16e   :  { %v184_v33 = vpop.f32.mrb[1].mxu0  ;;  %v202_v34 = vmul.f32 %v182_v32, %v182_v32 }
 0x16f   :  { %v186_v37 = vpop.f32.mrb[2].mxu0  ;;  %v191_v38 = vadd.f32 %v184_v33, %v182_v32  ;;  %v203_v39 = vmul.f32 %v184_v33, %v184_v33 }
 0x170   :  { %v187_v40 = vpop.f32.mrb[3].mxu0 }
 0x171   :  { %192 = vadd.xlane.f32.xlu0 %v191_v38  ;;  %v204_v43 = vadd.f32 %v203_v39, %v202_v34 }
 0x173   :  { %205 = vadd.xlane.f32.xlu1 %v204_v43 }
 0x1fe   :  { %v193_v44 = vpop.xlane.xlu0 %192 }
 0x1ff   :  { %v195_v45 = vrot.slane %v193_v44, 4 }
 0x200   :  { %v206_v46 = vpop.xlane.xlu1 %205 }
 0x201   :  { %v197_v47 = vadd.f32 %v195_v45, %v193_v44  ;;  %v208_v48 = vrot.slane %v206_v46, 4 }
 0x203   :  { %v199_v49 = vrot.slane %v197_v47, 4  ;;  %v210_v50 = vadd.f32 %v208_v48, %v206_v46 }
 0x205   :  { %v201_v51 = vsel %vm141_vm8, %v197_v47, %v199_v49  ;;  %v212_v52 = vrot.slane %v210_v50, 4 }
 0x206   :  { %v215_v53 = vmul.f32 0.001953125, %v201_v51 }
 0x207   :  { %v214_v54 = vsel %vm141_vm8, %v210_v50, %v212_v52 }
 0x208   :  { %v217_v55 = vmul.f32 %v215_v53, %v215_v53  ;;  %v216_v56 = vmul.f32 0.001953125, %v214_v54 }
 0x20a   :  { %v218_v59 = vsub.f32 %v216_v56, %v217_v55 }
 0x20c   :  { %v219_v60 = vmax.f32 %v218_v59, 0.0 }
 0x20e   :  { %v220_v63 = vadd.f32 1e-05, %v219_v60 }
 0x210   :  { %443 = vrsqrt.f32 %v220_v63 }
 0x21a   :  { %v444_v3 = vpop.eup %443 }
 0x21b   :  { %v222_v5 = vmul.f32 %v444_v3, %v189_v2 }
 0x21d   :  { %227 = vperm.xlu0 %441, %v222_v5   ;;  %v223_v11 = vmul.f32 %v222_v5, %v215_v53 }
 0x21f   :  { %v224_v12 = vsub.f32 %v190_v6, %v223_v11 }
 0x221   :  { %234 = vperm.xlu1 %442, %v224_v12  }
 0x29c   :  { %v228_v13 = vpop.permute.xlu0 %227 }
 0x29d   :  { %v230_v16 = vmul.f32 %v228_v13, %v182_v32  ;;  %v231_v18 = vmul.f32 %v228_v13, %v184_v33 }
 0x2a0   :  { %v235_v17 = vpop.permute.xlu1 %234 }
 0x2a1   :  { %v237_v19 = vadd.f32 %v235_v17, %v230_v16  ;;  %v238_v20 = vadd.f32 %v235_v17, %v231_v18 }
 0x2a3   :  { %v239_v21 = vmax.f32 %v237_v19, 0.0  ;;  %v240_v22 = vmax.f32 %v238_v20, 0.0 }
 0x2a5   :  { %259 = vrot.lane.b32.xlu0 %v239_v21, %s450_s12  ;;  %241 = vrot.lane.b32.xlu1 %v239_v21, %s448_s30 }
 0x2a9   :  { %265 = vrot.lane.b32.xlu0 %v239_v21, %s451_s0  ;;  %243 = vrot.lane.b32.xlu1 %v240_v22, %s448_s30 }
 0x2ad   :  { %271 = vrot.lane.b32.xlu0 %v239_v21, %s452_s13  ;;  %247 = vrot.lane.b32.xlu1 %v239_v21, %s447_s29 }
 0x2b1   :  { %277 = vrot.lane.b32.xlu0 %v239_v21, %s454_s14  ;;  %249 = vrot.lane.b32.xlu1 %v240_v22, %s447_s29 }
 0x2b5   :  { %283 = vrot.lane.b32.xlu0 %v239_v21, %s455_s15  ;;  %253 = vrot.lane.b32.xlu1 %v239_v21, %s449_s11 }
 0x2b9   :  { %255 = vrot.lane.b32.xlu1 %v240_v22, %s449_s11 }
 0x2bd   :  { %261 = vrot.lane.b32.xlu1 %v240_v22, %s450_s12 }
 0x2c1   :  { %267 = vrot.lane.b32.xlu1 %v240_v22, %s451_s0 }
 0x2c5   :  { %273 = vrot.lane.b32.xlu1 %v240_v22, %s452_s13 }
 0x2c9   :  { %279 = vrot.lane.b32.xlu1 %v240_v22, %s454_s14 }
 0x2cd   :  { %285 = vrot.lane.b32.xlu1 %v240_v22, %s455_s15 }
 0x317   :  { %v242_v23 = vpop.permute.xlu1 %241  ;;  %v260_v43 = vpop.permute.xlu0 %259 }
 0x31b   :  { %v244_v24 = vpop.permute.xlu1 %243  ;;  %v266_v48 = vpop.permute.xlu0 %265 }
 0x31c   :  { %v245_v28 = vsel %vm56_vm1, %v242_v23, %v244_v24  ;;  %v246_v31 = vsel %vm56_vm1, %v244_v24, %v242_v23 }
 0x31d   :  { %v289_v37 = vmul.f32 %v246_v31, %v555_v8  ;;  %v290_v39 = vmul.f32 %v245_v28, %v560_v9 }
 0x31f   :  { %v248_v27 = vpop.permute.xlu1 %247  ;;  %v272_v54 = vpop.permute.xlu0 %271 }
 0x323   :  { %v250_v32 = vpop.permute.xlu1 %249  ;;  %v278_v6 = vpop.permute.xlu0 %277 }
 0x324   :  { %v251_v33 = vsel %vm63_vm0, %v248_v27, %v250_v32  ;;  %v252_v34 = vsel %vm63_vm0, %v250_v32, %v248_v27  ;;  %v307_v27 = vld [vmem:[%s802_s5] sm:$0xf] }
 0x325   :  { %v291_v38 = vmul.f32 %v252_v34, %v548_v7  ;;  %v292_v40 = vmul.f32 %v251_v33, %v565_v10 }
 0x327   :  { %v254_v44 = vpop.permute.xlu1 %253  ;;  %v309_v45 = vpack.c.bf16 %v292_v40, %v290_v39  ;;  %v308_v46 = vpack.c.bf16 %v291_v38, %v289_v37  ;;  %v284_v18 = vpop.permute.xlu0 %283 }
 0x329   :  { %327 = vmatprep.subr.bf16.mxu1 %v309_v45 }
 0x32a   :  { %328 = vmatpush1.bf16.msra.mxu1 %v308_v46 }
 0x32b   :  { %v256_v47 = vpop.permute.xlu1 %255 }
 0x32c   :  { %v257_v49 = vsel %vm70_vm2, %v254_v44, %v256_v47  ;;  %v258_v8 = vsel %vm70_vm2, %v256_v47, %v254_v44 }
 0x32d   :  { %v293_v10 = vmul.f32 %v258_v8, %v583_v25  ;;  %v294_v51 = vmul.f32 %v257_v49, %v589_v26  ;;  %v298_v26 = vmul.f32 %v240_v22, %v613_v35 }
 0x32f   :  { %v262_v50 = vpop.permute.xlu1 %261 }
 0x330   :  { %v263_v7 = vsel %vm77_vm3, %v260_v43, %v262_v50  ;;  %v264_v9 = vsel %vm77_vm3, %v262_v50, %v260_v43 }
 0x331   :  { %v295_v52 = vmul.f32 %v264_v9, %v598_v29  ;;  %v296_v53 = vmul.f32 %v263_v7, %v603_v30  ;;  %v297_v29 = vmul.f32 %v239_v21, %v618_v36 }
 0x333   :  { %v268_v55 = vpop.permute.xlu1 %267  ;;  %v311_v56 = vpack.c.bf16 %v296_v53, %v294_v51  ;;  %v310_v59 = vpack.c.bf16 %v295_v52, %v293_v10  ;;  %v368_v51 = vld [vmem:[%s803_s6] sm:$0xff] }
 0x334   :  { %v269_v60 = vsel %vm84_vm4, %v266_v48, %v268_v55  ;;  %v270_v63 = vsel %vm84_vm4, %v268_v55, %v266_v48 }
 0x335   :  { %v299_v2 = vmul.f32 %v269_v60, %v627_v41  ;;  %v300_v25 = vmul.f32 %v270_v63, %v632_v42  ;;  %329 = vmatprep.subr.bf16.mxu1 %v311_v56 }
 0x336   :  { %330 = vmatpush1.bf16.msra.mxu1 %v310_v59 }
 0x337   :  { %v274_v30 = vpop.permute.xlu1 %273  ;;  %v313_v3 = vpack.c.bf16 %v300_v25, %v298_v26  ;;  %v312_v5 = vpack.c.bf16 %v299_v2, %v297_v29 }
 0x338   :  { %v275_v11 = vsel %vm91_vm5, %v272_v54, %v274_v30  ;;  %v276_v12 = vsel %vm91_vm5, %v274_v30, %v272_v54  ;;  %v369_v54 = vld [vmem:[%s804_s7] sm:$0xff] }
 0x339   :  { %331 = vmatprep.subr.bf16.mxu1 %v313_v3  ;;  %v301_v36 = vmul.f32 %v275_v11, %v648_v57  ;;  %v302_v13 = vmul.f32 %v276_v12, %v654_v58 }
 0x33a   :  { %332 = vmatpush1.bf16.msra.mxu1 %v312_v5 }
 0x33b   :  { %v280_v41 = vpop.permute.xlu1 %279 }
 0x33c   :  { %v281_v42 = vsel %vm98_vm6, %v278_v6, %v280_v41  ;;  %v282_v35 = vsel %vm98_vm6, %v280_v41, %v278_v6 }
 0x33d   :  { %v303_v16 = vmul.f32 %v281_v42, %v663_v61  ;;  %v304_v17 = vmul.f32 %v282_v35, %v668_v62 }
 0x33f   :  { %v286_v19 = vpop.permute.xlu1 %285  ;;  %v315_v20 = vpack.c.bf16 %v304_v17, %v302_v13  ;;  %v314_v21 = vpack.c.bf16 %v303_v16, %v301_v36 }
 0x340   :  { %v287_v22 = vsel %vm105_vm7, %v284_v18, %v286_v19  ;;  %v288_v23 = vsel %vm105_vm7, %v286_v19, %v284_v18 }
 0x341   :  { %v305_v24 = vmul.f32 %v287_v22, %v682_v14  ;;  %v306_v57 = vmul.f32 %v288_v23, %v687_v15  ;;  %333 = vmatprep.subr.bf16.mxu1 %v315_v20 }
 0x342   :  { %334 = vmatpush1.bf16.msra.mxu1 %v314_v21 }
 0x343   :  { %v316_v58 = vpack.c.bf16 %v305_v24, %v305_v24  ;;  %v317_v61 = vpack.c.bf16 %v306_v57, %v306_v57 }
 0x345   :  { %430 = vmatprep.subr.msk.bf16.mxu1 %vm141_vm8, %v317_v61  ;;  %v322_v62 = vsel %vm141_vm8, %v316_v58, 0 }
 0x346   :  { %336 = vmatpush1.bf16.msra.mxu1 %v322_v62 }
 0x349   :  { %431 = vmatmul.mubr.msk.bf16.vlgmr.msra.gmra.mrb[0].mxu1 %vm137_vm9, %v307_v27 }
 0x41c   :  { %v361_v4 = vpop.f32.mrb[0].mxu1 }
 0x41d   :  { %v363_v28 = vpop.f32.mrb[1].mxu1  ;;  %v381_v14 = vmul.f32 %v361_v4, %v361_v4 }
 0x41e   :  { %v365_v31 = vpop.f32.mrb[2].mxu1  ;;  %v370_v15 = vadd.f32 %v363_v28, %v361_v4  ;;  %v382_v32 = vmul.f32 %v363_v28, %v363_v28 }
 0x41f   :  { %v366_v33 = vpop.f32.mrb[3].mxu1 }
 0x420   :  { %371 = vadd.xlane.f32.xlu0 %v370_v15  ;;  %v383_v34 = vadd.f32 %v382_v32, %v381_v14 }
 0x422   :  { %384 = vadd.xlane.f32.xlu1 %v383_v34 }
 0x4ad   :  { %v372_v37 = vpop.xlane.xlu0 %371 }
 0x4ae   :  { %v374_v38 = vrot.slane %v372_v37, 4 }
 0x4af   :  { %v385_v39 = vpop.xlane.xlu1 %384 }
 0x4b0   :  { %v376_v40 = vadd.f32 %v374_v38, %v372_v37  ;;  %v387_v43 = vrot.slane %v385_v39, 4 }
 0x4b2   :  { %v378_v44 = vrot.slane %v376_v40, 4  ;;  %v389_v45 = vadd.f32 %v387_v43, %v385_v39 }
 0x4b4   :  { %v380_v46 = vsel %vm141_vm8, %v376_v40, %v378_v44  ;;  %v391_v47 = vrot.slane %v389_v45, 4 }
 0x4b5   :  { %v394_v48 = vmul.f32 0.001953125, %v380_v46 }
 0x4b6   :  { %v393_v49 = vsel %vm141_vm8, %v389_v45, %v391_v47 }
 0x4b7   :  { %v396_v8 = vmul.f32 %v394_v48, %v394_v48  ;;  %v395_v50 = vmul.f32 0.001953125, %v393_v49 }
 0x4b9   :  { %v397_v7 = vsub.f32 %v395_v50, %v396_v8 }
 0x4bb   :  { %v398_v9 = vmax.f32 %v397_v7, 0.0 }
 0x4bd   :  { %v399_v10 = vadd.f32 1e-05, %v398_v9 }
 0x4bf   :  { %445 = vrsqrt.f32 %v399_v10 }
 0x4c9   :  { %v446_v52 = vpop.eup %445 }
 0x4ca   :  { %v401_v53 = vmul.f32 %v446_v52, %v368_v51 }
 0x4cc   :  { %406 = vperm.xlu0 %441, %v401_v53   ;;  %v402_v55 = vmul.f32 %v401_v53, %v394_v48 }
 0x4ce   :  { %v403_v56 = vsub.f32 %v369_v54, %v402_v55 }
 0x4d0   :  { %413 = vperm.xlu1 %442, %v403_v56  }
 0x54b   :  { %v407_v59 = vpop.permute.xlu0 %406 }
 0x54c   :  { %v409_v60 = vmul.f32 %v407_v59, %v361_v4  ;;  %v410_v63 = vmul.f32 %v407_v59, %v363_v28 }
 0x54f   :  { %v414_v2 = vpop.permute.xlu1 %413 }
 0x550   :  { %v416_v25 = vadd.f32 %v414_v2, %v409_v60  ;;  %v417_v26 = vadd.f32 %v414_v2, %v410_v63 }
 0x552   :  { %v418_v29 = vadd.f32 %v416_v25, %v504_v0  ;;  %v419_v30 = vadd.f32 %v417_v26, %v513_v1 }
 0x554   :  { %v420_v3 = vmax.f32 %v418_v29, 0.0  ;;  %v421_v5 = vmax.f32 %v419_v30, 0.0 }
 0x556   :  { %422 = vst [vmem:[%s805_s8] sm:$0xff] %v420_v3  ;;  %423 = vst [vmem:[%s805_s8 + $0x8] sm:$0xff] %v421_v5 }

</bundles_post_ra>
